<compile_context>
chip_gen: v7x
topology: tpu7x:2x2x1
jax: 0.10.0
libtpu: 0.0.40
codegen_flags: <defaults>
</compile_context>

<pallas_src>
import functools

import jax
import jax.numpy as jnp
from jax.experimental import pallas as pl
from jax.experimental.pallas import tpu as pltpu

SPECS = dict(
    is_map_time=True,
    is_trm=False,
    num_clasf_gnn_layers=1,
    num_clasf_fc_layers=2,
    num_traj=4,
    classification_steps=4,
    node_dim=32,
    hidden_dim=32,
    clasf_out_dim=1,
    dropout_rate=0.0,
)


def _classifier_kernel(x_ref, adj_ref, mask_ref, scal_ref, wd_ref, w2_ref,
                       out_ref, *, node_dim, feat_dim):
    D, F = node_dim, feat_dim
    Bt, N, _ = x_ref.shape

    # Packed weights: [wg(F), bg(1), wt(1), bt(1), w1(2D), b1(1)] rows, D lanes.
    wd = wd_ref[...]
    wg = wd[0:F, :]                       # (F, D)
    bg = wd[F:F + 1, :]                   # (1, D)
    wt = wd[F + 1:F + 2, :]               # (1, D)
    bt = wd[F + 2:F + 3, :]               # (1, D)
    w1 = wd[F + 3:F + 3 + 2 * D, :]       # (2D, D)
    b1 = wd[F + 3 + 2 * D:F + 4 + 2 * D, :]  # (1, D)
    w2p = w2_ref[...]
    w2 = w2p[0:D, :]                      # (D, out)
    b2 = w2p[D:D + 1, :]                  # (1, out)

    scal = scal_ref[...]                  # (Bt, 1, 2): [t, 1/num_valid_nodes]
    t_vals = scal[:, 0, 0:1]              # (Bt, 1)
    inv_cnt = scal[:, 0, 1:2]             # (Bt, 1)

    # --- GCNConv: relu(adj @ (x @ Wg + bg)); batch folded into matmul M ---
    x2d = x_ref[...].reshape(Bt * N, F)
    h = jnp.dot(x2d, wg, preferred_element_type=jnp.float32) + bg  # (Bt*N, D)
    h = h.reshape(Bt, N, D)
    h = jnp.einsum('bij,bjd->bid', adj_ref[...], h,
                   preferred_element_type=jnp.float32)             # (Bt, N, D)
    h = jnp.maximum(h, 0.0)

    # --- MaskedAvgNodePooling: masked sum over nodes * precomputed 1/count ---
    mask_b = mask_ref[...]                                         # (Bt, N, 1)
    pooled = jnp.sum(h * mask_b, axis=1) * inv_cnt                 # (Bt, D)

    # --- time_mlp: Linear(1, D) as VPU broadcast multiply (no K=1 matmul) ---
    t_emb = t_vals * wt + bt                                       # (Bt, D)

    # --- mlp fc-0: single (Bt, 2D) @ (2D, D) matmul + ReLU ---
    ci = jnp.concatenate([pooled, t_emb], axis=1)                  # (Bt, 2D)
    h1 = jnp.dot(ci, w1, preferred_element_type=jnp.float32) + b1
    h1 = jnp.maximum(h1, 0.0)                                      # (Bt, D)

    # --- mlp fc-1: Linear(D, out) + Sigmoid ---
    logits = jnp.dot(h1, w2, preferred_element_type=jnp.float32) + b2
    out_ref[...] = jax.nn.sigmoid(logits).reshape(Bt, 1, -1)


def resilience_classifier_forward(x, adj, mask, t, params, *, batch_block=None):
    """x: (B, N, F)  adj: (B, N, N)  mask: (B, N)  t: (B, 1) -> (B, out_dim)."""
    B, N, F = x.shape
    D = params['wg'].shape[1]
    out_dim = params['w2'].shape[1]

    # Batch block: at most 2 grid steps (both v7x TensorCores busy when B>=2),
    # capped so a huge batch does not blow VMEM on v7x (64 MiB).
    if batch_block is None:
        Bt = max(1, min(pl.cdiv(B, 2), 1024))
    else:
        Bt = batch_block
    n_steps = pl.cdiv(B, Bt)
    Bp = Bt * n_steps

    x = x.astype(jnp.float32)
    adj = adj.astype(jnp.float32)
    mask_f = mask.astype(jnp.float32)

    # Hoist the pooling reciprocal out of the kernel; pack t with it.
    inv_cnt = 1.0 / jnp.sum(mask_f, axis=1)                          # (B,)
    scal = jnp.stack([t.reshape(B).astype(jnp.float32), inv_cnt], axis=1)
    scal = scal.reshape(B, 1, 2)
    mask3 = mask_f.reshape(B, N, 1)

    if Bp != B:
        pad = Bp - B
        x = jnp.pad(x, ((0, pad), (0, 0), (0, 0)))
        adj = jnp.pad(adj, ((0, pad), (0, 0), (0, 0)))
        mask3 = jnp.pad(mask3, ((0, pad), (0, 0), (0, 0)))
        scal = jnp.pad(scal, ((0, pad), (0, 0), (0, 0)))

    # Pack the 8 small weight/bias arrays into 2 input streams.
    wd_pack = jnp.concatenate([params['wg'], params['bg'], params['wt'],
                               params['bt'], params['w1'], params['b1']],
                              axis=0)                                # (F+3+2D+1, D)
    w2_pack = jnp.concatenate([params['w2'], params['b2']], axis=0)  # (D+1, out)

    kernel = functools.partial(_classifier_kernel, node_dim=D, feat_dim=F)
    out = pl.pallas_call(
        kernel,
        out_shape=jax.ShapeDtypeStruct((Bp, 1, out_dim), jnp.float32),
        grid=(n_steps,),
        in_specs=[
            pl.BlockSpec((Bt, N, F), lambda b: (b, 0, 0)),   # x
            pl.BlockSpec((Bt, N, N), lambda b: (b, 0, 0)),   # adj
            pl.BlockSpec((Bt, N, 1), lambda b: (b, 0, 0)),   # mask
            pl.BlockSpec((Bt, 1, 2), lambda b: (b, 0, 0)),   # [t, 1/count]
            pl.BlockSpec(wd_pack.shape, lambda b: (0, 0)),   # packed weights D-wide
            pl.BlockSpec(w2_pack.shape, lambda b: (0, 0)),   # packed fc-1 weights
        ],
        out_specs=pl.BlockSpec((Bt, 1, out_dim), lambda b: (b, 0, 0)),
        compiler_params=pltpu.CompilerParams(dimension_semantics=("parallel",)),
    )(x, adj, mask3, scal, wd_pack, w2_pack)
    return out.reshape(Bp, out_dim)[:B]


if __name__ == "__main__":
    key = jax.random.PRNGKey(0)
    B, N = 2, 8
    F = SPECS['num_traj'] * SPECS['classification_steps']   # 16
    D = SPECS['node_dim']                                    # 32
    out_dim = SPECS['clasf_out_dim']                         # 1

    keys = jax.random.split(key, 12)

    def linear_init(kw, kb, fan_in, fan_out):
        bound = 1.0 / jnp.sqrt(jnp.float32(fan_in))
        w = jax.random.uniform(kw, (fan_in, fan_out), jnp.float32, -bound, bound)
        b = jax.random.uniform(kb, (1, fan_out), jnp.float32, -bound, bound)
        return w, b

    wg, bg = linear_init(keys[0], keys[1], F, D)        # GCNConv
    wt, bt = linear_init(keys[2], keys[3], 1, D)        # time_mlp
    w1, b1 = linear_init(keys[4], keys[5], 2 * D, D)    # mlp fc-0
    w2, b2 = linear_init(keys[6], keys[7], D, out_dim)  # mlp fc-1
    params = dict(wg=wg, bg=bg, wt=wt, bt=bt, w1=w1, b1=b1, w2=w2, b2=b2)

    x = jax.random.normal(keys[8], (B, N, F), jnp.float32)
    a = jax.random.uniform(keys[9], (B, N, N), jnp.float32)
    adj = 0.5 * (a + jnp.swapaxes(a, 1, 2))                       # symmetric dense adj
    mask = (jax.random.uniform(keys[10], (B, N)) > 0.3).astype(jnp.float32)
    mask = mask.at[:, 0].set(1.0)                                  # >=1 valid node
    t = jax.random.uniform(keys[11], (B, 1), jnp.float32)

    out = resilience_classifier_forward(x, adj, mask, t, params)
    out = jax.block_until_ready(out)

    # Pure-JAX reference of the same forward pass.
    h_ref = jnp.maximum(jnp.einsum('bij,bjd->bid', adj, x @ wg + bg), 0.0)
    pooled_ref = jnp.einsum('bn,bnd->bd', mask, h_ref) / jnp.sum(mask, axis=1, keepdims=True)
    t_emb_ref = t @ wt + bt
    ci_ref = jnp.concatenate([pooled_ref, t_emb_ref], axis=1)
    ref = jax.nn.sigmoid(jnp.maximum(ci_ref @ w1 + b1, 0.0) @ w2 + b2)

    assert out.shape == (B, out_dim)
    assert jnp.allclose(out, ref, atol=1e-5, rtol=1e-5), (out, ref)
    print("KERNEL_OK")
</pallas_src>

<mosaic_0001>
module attributes {stable_mosaic.version = 11 : i64} {
  func.func @_classifier_kernel(%arg0: i32, %arg1: memref<1x8x16xf32, #tpu.memory_space<vmem>>, %arg2: memref<1x8x8xf32, #tpu.memory_space<vmem>>, %arg3: memref<1x8x1xf32, #tpu.memory_space<vmem>>, %arg4: memref<1x1x2xf32, #tpu.memory_space<vmem>>, %arg5: memref<84x32xf32, #tpu.memory_space<vmem>>, %arg6: memref<33x1xf32, #tpu.memory_space<vmem>>, %arg7: memref<1x1x1xf32, #tpu.memory_space<vmem>>) attributes {dimension_semantics = [#tpu.dimension_semantics<parallel>], iteration_bounds = array<i64: 2>, scalar_prefetch = 0 : i64, scratch_operands = 0 : i64, tpu.core_type = #tpu.core_type<tc>, window_params = [{transform_indices = @transform_0, window_bounds = array<i64: 1, 8, 16>}, {transform_indices = @transform_1, window_bounds = array<i64: 1, 8, 8>}, {transform_indices = @transform_2, window_bounds = array<i64: 1, 8, 1>}, {transform_indices = @transform_3, window_bounds = array<i64: 1, 1, 2>}, {pipeline_mode = #tpu.pipeline_mode<synchronous>, transform_indices = @transform_4, window_bounds = array<i64: 84, 32>}, {pipeline_mode = #tpu.pipeline_mode<synchronous>, transform_indices = @transform_5, window_bounds = array<i64: 33, 1>}, {transform_indices = @transform_6, window_bounds = array<i64: 1, 1, 1>}]} {
    %c0 = arith.constant 0 : index
    %c0_0 = arith.constant 0 : index
    %0 = vector.load %arg5[%c0, %c0_0] : memref<84x32xf32, #tpu.memory_space<vmem>>, vector<84x32xf32>
    %1 = vector.extract_strided_slice %0 {offsets = [0, 0], sizes = [16, 32], strides = [1, 1]} : vector<84x32xf32> to vector<16x32xf32>
    %2 = vector.extract_strided_slice %0 {offsets = [16, 0], sizes = [1, 32], strides = [1, 1]} : vector<84x32xf32> to vector<1x32xf32>
    %3 = vector.extract_strided_slice %0 {offsets = [17, 0], sizes = [1, 32], strides = [1, 1]} : vector<84x32xf32> to vector<1x32xf32>
    %4 = vector.extract_strided_slice %0 {offsets = [18, 0], sizes = [1, 32], strides = [1, 1]} : vector<84x32xf32> to vector<1x32xf32>
    %5 = vector.extract_strided_slice %0 {offsets = [19, 0], sizes = [64, 32], strides = [1, 1]} : vector<84x32xf32> to vector<64x32xf32>
    %6 = vector.extract_strided_slice %0 {offsets = [83, 0], sizes = [1, 32], strides = [1, 1]} : vector<84x32xf32> to vector<1x32xf32>
    %c0_1 = arith.constant 0 : index
    %c0_2 = arith.constant 0 : index
    %7 = vector.load %arg6[%c0_1, %c0_2] : memref<33x1xf32, #tpu.memory_space<vmem>>, vector<33x1xf32>
    %8 = vector.extract_strided_slice %7 {offsets = [0, 0], sizes = [32, 1], strides = [1, 1]} : vector<33x1xf32> to vector<32x1xf32>
    %9 = vector.extract_strided_slice %7 {offsets = [32, 0], sizes = [1, 1], strides = [1, 1]} : vector<33x1xf32> to vector<1x1xf32>
    %c0_3 = arith.constant 0 : index
    %c0_4 = arith.constant 0 : index
    %c0_5 = arith.constant 0 : index
    %10 = vector.load %arg4[%c0_3, %c0_4, %c0_5] : memref<1x1x2xf32, #tpu.memory_space<vmem>>, vector<1x1x2xf32>
    %11 = vector.extract_strided_slice %10 {offsets = [0, 0, 0], sizes = [1, 1, 1], strides = [1, 1, 1]} : vector<1x1x2xf32> to vector<1x1x1xf32>
    %12 = vector.shape_cast %11 : vector<1x1x1xf32> to vector<1x1xf32>
    %13 = vector.extract_strided_slice %10 {offsets = [0, 0, 1], sizes = [1, 1, 1], strides = [1, 1, 1]} : vector<1x1x2xf32> to vector<1x1x1xf32>
    %14 = vector.shape_cast %13 : vector<1x1x1xf32> to vector<1x1xf32>
    %c0_6 = arith.constant 0 : index
    %c0_7 = arith.constant 0 : index
    %c0_8 = arith.constant 0 : index
    %15 = vector.load %arg1[%c0_6, %c0_7, %c0_8] : memref<1x8x16xf32, #tpu.memory_space<vmem>>, vector<1x8x16xf32>
    %16 = vector.shape_cast %15 : vector<1x8x16xf32> to vector<8x16xf32>
    %cst = arith.constant dense<0.000000e+00> : vector<8x32xf32>
    %17 = tpu.matmul %16, %1, %cst {dimension_numbers = #tpu.dot_dimension_numbers<[1], [0], [0], [1], [0, 0, 1, 1], [], []>} : vector<8x16xf32>, vector<16x32xf32>, vector<8x32xf32> -> vector<8x32xf32>
    %18 = vector.broadcast %2 : vector<1x32xf32> to vector<8x32xf32>
    %19 = arith.addf %17, %18 : vector<8x32xf32>
    %20 = vector.shape_cast %19 : vector<8x32xf32> to vector<1x8x32xf32>
    %c0_9 = arith.constant 0 : index
    %c0_10 = arith.constant 0 : index
    %c0_11 = arith.constant 0 : index
    %21 = vector.load %arg2[%c0_9, %c0_10, %c0_11] : memref<1x8x8xf32, #tpu.memory_space<vmem>>, vector<1x8x8xf32>
    "tpu.trace_start"() <{level = 10 : i32, message = "bij,bjd->bid"}> : () -> ()
    %cst_12 = arith.constant dense<0.000000e+00> : vector<1x8x32xf32>
    %22 = tpu.matmul %21, %20, %cst_12 {dimension_numbers = #tpu.dot_dimension_numbers<[2], [1], [1], [2], [0, 0, 0, 1, 1, 2], [0], [0]>} : vector<1x8x8xf32>, vector<1x8x32xf32>, vector<1x8x32xf32> -> vector<1x8x32xf32>
    "tpu.trace_stop"() : () -> ()
    %cst_13 = arith.constant 0.000000e+00 : f32
    %23 = vector.broadcast %cst_13 : f32 to vector<1x8x32xf32>
    %24 = arith.maximumf %22, %23 : vector<1x8x32xf32>
    %c0_14 = arith.constant 0 : index
    %c0_15 = arith.constant 0 : index
    %c0_16 = arith.constant 0 : index
    %25 = vector.load %arg3[%c0_14, %c0_15, %c0_16] : memref<1x8x1xf32, #tpu.memory_space<vmem>>, vector<1x8x1xf32>
    %26 = vector.broadcast %25 : vector<1x8x1xf32> to vector<1x8x32xf32>
    %27 = arith.mulf %24, %26 : vector<1x8x32xf32>
    %cst_17 = arith.constant dense<0.000000e+00> : vector<1x32xf32>
    %28 = vector.multi_reduction <add>, %27, %cst_17 [1] : vector<1x8x32xf32> to vector<1x32xf32>
    %29 = vector.broadcast %14 : vector<1x1xf32> to vector<1x32xf32>
    %30 = arith.mulf %28, %29 : vector<1x32xf32>
    %31 = vector.broadcast %12 : vector<1x1xf32> to vector<1x32xf32>
    %32 = arith.mulf %31, %3 : vector<1x32xf32>
    %33 = arith.addf %32, %4 : vector<1x32xf32>
    %34 = tpu.concatenate %30, %33 in 1 : vector<1x32xf32>, vector<1x32xf32> -> vector<1x64xf32>
    %cst_18 = arith.constant dense<0.000000e+00> : vector<1x32xf32>
    %35 = tpu.matmul %34, %5, %cst_18 {dimension_numbers = #tpu.dot_dimension_numbers<[1], [0], [0], [1], [0, 0, 1, 1], [], []>} : vector<1x64xf32>, vector<64x32xf32>, vector<1x32xf32> -> vector<1x32xf32>
    %36 = arith.addf %35, %6 : vector<1x32xf32>
    %cst_19 = arith.constant 0.000000e+00 : f32
    %37 = vector.broadcast %cst_19 : f32 to vector<1x32xf32>
    %38 = arith.maximumf %36, %37 : vector<1x32xf32>
    %cst_20 = arith.constant dense<0.000000e+00> : vector<1x1xf32>
    %39 = tpu.matmul %38, %8, %cst_20 {dimension_numbers = #tpu.dot_dimension_numbers<[1], [0], [0], [1], [0, 0, 1, 1], [], []>} : vector<1x32xf32>, vector<32x1xf32>, vector<1x1xf32> -> vector<1x1xf32>
    %40 = arith.addf %39, %9 : vector<1x1xf32>
    %41 = arith.negf %40 : vector<1x1xf32>
    %42 = math.exp %41 : vector<1x1xf32>
    %cst_21 = arith.constant 1.000000e+00 : f32
    %43 = vector.broadcast %cst_21 : f32 to vector<1x1xf32>
    %44 = arith.addf %43, %42 : vector<1x1xf32>
    %45 = arith.divf %43, %44 : vector<1x1xf32>
    %46 = vector.shape_cast %45 : vector<1x1xf32> to vector<1x1x1xf32>
    %c0_22 = arith.constant 0 : index
    %c0_23 = arith.constant 0 : index
    %c0_24 = arith.constant 0 : index
    %47 = vector.load %arg7[%c0_22, %c0_23, %c0_24] : memref<1x1x1xf32, #tpu.memory_space<vmem>>, vector<1x1x1xf32>
    tpu.vector_store %arg7[%c0_22, %c0_23, %c0_24], %46 {strides = array<i32>} : memref<1x1x1xf32, #tpu.memory_space<vmem>>, vector<1x1x1xf32>,
    return
  }
  func.func @transform_0(%arg0: i32) -> (i32, i32, i32) {
    %c0_i32 = arith.constant 0 : i32
    %c0_i32_0 = arith.constant 0 : i32
    %c0_i32_1 = arith.constant 0 : i32
    return %arg0, %c0_i32, %c0_i32_0 : i32, i32, i32
  }
  func.func @transform_1(%arg0: i32) -> (i32, i32, i32) {
    %c0_i32 = arith.constant 0 : i32
    %c0_i32_0 = arith.constant 0 : i32
    %c0_i32_1 = arith.constant 0 : i32
    return %arg0, %c0_i32, %c0_i32_0 : i32, i32, i32
  }
  func.func @transform_2(%arg0: i32) -> (i32, i32, i32) {
    %c0_i32 = arith.constant 0 : i32
    %c0_i32_0 = arith.constant 0 : i32
    %c0_i32_1 = arith.constant 0 : i32
    return %arg0, %c0_i32, %c0_i32_0 : i32, i32, i32
  }
  func.func @transform_3(%arg0: i32) -> (i32, i32, i32) {
    %c0_i32 = arith.constant 0 : i32
    %c0_i32_0 = arith.constant 0 : i32
    %c0_i32_1 = arith.constant 0 : i32
    return %arg0, %c0_i32, %c0_i32_0 : i32, i32, i32
  }
  func.func @transform_4(%arg0: i32) -> (i32, i32) {
    %c0_i32 = arith.constant 0 : i32
    %c0_i32_0 = arith.constant 0 : i32
    %c0_i32_1 = arith.constant 0 : i32
    return %c0_i32, %c0_i32_0 : i32, i32
  }
  func.func @transform_5(%arg0: i32) -> (i32, i32) {
    %c0_i32 = arith.constant 0 : i32
    %c0_i32_0 = arith.constant 0 : i32
    %c0_i32_1 = arith.constant 0 : i32
    return %c0_i32, %c0_i32_0 : i32, i32
  }
  func.func @transform_6(%arg0: i32) -> (i32, i32, i32) {
    %c0_i32 = arith.constant 0 : i32
    %c0_i32_0 = arith.constant 0 : i32
    %c0_i32_1 = arith.constant 0 : i32
    return %arg0, %c0_i32, %c0_i32_0 : i32, i32, i32
  }
}

</mosaic_0001>

<bundles_post_ra>
// kernel: tpu_custom_call.1
= control target key start
LH: loop header
LB: loop body
LE: loop exit
PB: predicated region body
PF: predicated region fallthrough
CT: control target
= control target key end

     0   :  { %s946_s21 = smov 0   ;;  %s1057_s0 = inlined_call_operand.vmem [shape: f32[2,8,16], index: 0, kind: input, shape index: {}]   ;;  %s1058_s1 = inlined_call_operand.vmem [shape: f32[2,8,8], index: 1, kind: input, shape index: {}]   ;;  %s1059_s2 = inlined_call_operand.vmem [shape: f32[2,8,1], index: 2, kind: input, shape index: {}]   ;;  %s1060_s3 = inlined_call_operand.vmem [shape: f32[2,1,2], index: 3, kind: input, shape index: {}]   ;;  %s1061_s4 = inlined_call_operand.vmem [shape: f32[84,32], index: 4, kind: input, shape index: {}]   ;;  %s1062_s5 = inlined_call_operand.vmem [shape: f32[33,1], index: 5, kind: input, shape index: {}]   ;;  %s1063_s6 = inlined_call_operand.vmem [shape: f32[2,1,1], index: 6, kind: output, shape index: {}]  }
   0x1 LB: > { %s780_s22 = sadd.s32 4294967295, %s903_s21   ;;  %p784_p0 = scmp.ge.s32.totalorder %s903_s21, 1  ;;  %s903_s21 = sphi %s946_s21, %s16_s21  }
   0x2   : > { %p237_p1 = scmp.lt.s32.totalorder %s903_s21, 3 }
   0x4   : > { %p238_p2 = pnand %p784_p0, %p237_p1 }
   0x5   : > { %v293_v0 = vld [vmem:[%s1061_s4] sm:$0xff] (!%p238_p2)  ;;  %v294_v1 = vld [vmem:[%s1061_s4 + $0x8] sm:$0xff] (!%p238_p2)  ;;  %p275_p3 = scmp.lt.s32.totalorder (!%p238_p2), %s780_s22, 1  ;;  %v905_v2 = vmov (!%p238_p2), 0.0|0.0   ;;  %vm906_vm0 = vmmov (!%p238_p2), 0   ;;  %v907_v4 = vmov (!%p238_p2), 0.0   ;;  %v311_v10 = vlaneseq (!%p238_p2) }
   0x6   : > { %241 = sbr.rel (%p238_p2) target bundleno = 921 (0x399), region = 44  ;;  %856 = vmatprep.subr.bf16.mxu0 (!%p238_p2), %v905_v2  ;;  %v857_v3 = vpack.c.bf16 (!%p238_p2), %v294_v1, %v293_v0  ;;  %818 = vmatprep.mubr.msk.f32.mxu0 (!%p238_p2), %vm906_vm0, %v907_v4  ;;  %v908_v5 = vmov (!%p238_p2), 0   ;;  %vm315_vm1 = vcmask (!%p238_p2), 130048   ;;  %v909_v9 = vmov (!%p238_p2), 1   ;;  %v295_v13 = vld [vmem:[%s1061_s4 + $0x10] sm:$0xff] (!%p238_p2)  ;;  %s910_s15 = smov (!%p238_p2), 32  }
   0x7   : > { %891 = vset.pattern.permute.xlu0 (!%p238_p2), %v908_v5  ;;  %859 = vmatprep.subr.bf16.mxu1 (!%p238_p2), %v905_v2  ;;  %v312_v11 = vshrl.u32 (!%p238_p2), %v311_v10, 7  ;;  %v500_v16 = vrot.slane (!%p238_p2), %v295_v13, 1  ;;  %vm390_vm2 = vcmask (!%p238_p2), 64512   ;;  %v296_v25 = vld [vmem:[%s1061_s4 + $0x18] sm:$0xff] (!%p238_p2)  ;;  %v297_v26 = vld [vmem:[%s1061_s4 + $0x20] sm:$0xff] (!%p238_p2)  ;;  %v518_v27 = vrot.slane (!%p238_p2), %v295_v13, 3 }
   0x8   : > { %858 = vmatpush3.bf16.msra.mxu0 (!%p238_p2), %v857_v3  ;;  %842 = vmatprep.mubr.msk.f32.mxu1 (!%p238_p2), %vm906_vm0, %v907_v4  ;;  %v519_v28 = vrot.slane (!%p238_p2), %v296_v25, 3  ;;  %v521_v29 = vrot.slane (!%p238_p2), %v297_v26, 3  ;;  %vm517_vm3 = vcmask (!%p238_p2), 1044480   ;;  %v298_v32 = vld [vmem:[%s1061_s4 + $0x28] sm:$0xff] (!%p238_p2)  ;;  %v299_v33 = vld [vmem:[%s1061_s4 + $0x30] sm:$0xff] (!%p238_p2)  ;;  %v300_v34 = vld [vmem:[%s1061_s4 + $0x38] sm:$0xff] (!%p238_p2) }
   0x9   : > { %821 = vmatprep.subr.mxu0 (!%p238_p2), %v907_v4  ;;  %892 = vset.pattern.permute.xlu1 (!%p238_p2), %v909_v9  ;;  %v982_v12 = vsub.s32 (!%p238_p2), 0, %v312_v11  ;;  %v523_v36 = vrot.slane (!%p238_p2), %v298_v32, 3  ;;  %v525_v37 = vrot.slane (!%p238_p2), %v299_v33, 3  ;;  %v301_v38 = vld [vmem:[%s1061_s4 + $0x40] sm:$0xff] (!%p238_p2)  ;;  %v527_v39 = vrot.slane (!%p238_p2), %v300_v34, 3  ;;  %v302_v47 = vld [vmem:[%s1061_s4 + $0x48] sm:$0xff] (!%p238_p2) }
   0xa   : > { %v520_v30 = vsel (!%p238_p2), %vm517_vm3, %v518_v27, %v519_v28  ;;  %v522_v31 = vsel (!%p238_p2), %vm517_vm3, %v519_v28, %v521_v29  ;;  %v529_v40 = vrot.slane (!%p238_p2), %v301_v38, 3  ;;  %v303_v48 = vld [vmem:[%s1061_s4 + $0x50] sm:$0xf] (!%p238_p2)  ;;  %v531_v49 = vrot.slane (!%p238_p2), %v302_v47, 3  ;;  %v304_v54 = vld [vmem:[%s1062_s5] sm:$0xff] (!%p238_p2)  ;;  %v305_v55 = vld [vmem:[%s1062_s5 + $0x8] sm:$0xff] (!%p238_p2) }
   0xb   : > { %v314_v20 = vrot.slane (!%p238_p2), %v295_v13, %v982_v12  ;;  %v860_v35 = vpack.c.bf16 (!%p238_p2), %v522_v31, %v520_v30  ;;  %v524_v41 = vsel (!%p238_p2), %vm517_vm3, %v521_v29, %v523_v36  ;;  %v526_v42 = vsel (!%p238_p2), %vm517_vm3, %v523_v36, %v525_v37  ;;  %v306_v10 = vld [vmem:[%s1062_s5 + $0x10] sm:$0xff] (!%p238_p2)  ;;  %v307_v11 = vld [vmem:[%s1062_s5 + $0x18] sm:$0xff] (!%p238_p2) }
   0xc   : > { %v863_v43 = vpack.c.bf16 (!%p238_p2), %v526_v42, %v524_v41  ;;  %v528_v44 = vsel (!%p238_p2), %vm517_vm3, %v525_v37, %v527_v39  ;;  %v530_v45 = vsel (!%p238_p2), %vm517_vm3, %v527_v39, %v529_v40  ;;  %v533_v50 = vrot.slane (!%p238_p2), %v303_v48, 3 }
   0xd   : > { %s1065_s22 = smov (!%p275_p3, %s780_s22), 1  ;;  %861 = vmatpush3.bf16.msra.mxu1 %v860_v35  ;;  %v866_v46 = vpack.c.bf16 %v530_v45, %v528_v44  ;;  %v532_v51 = vsel %vm517_vm3, %v529_v40, %v531_v49  ;;  %v872_v56 = vpack.c.bf16 %v305_v55, %v304_v54  ;;  %vm472_vm4 = vcmask 261120  }
   0xe   : > { %s967_s27 = sshll.u32 %s1065_s22, 3  ;;  %s289_s9 = scalar_lea.vmem %s1060_s3, %s1065_s22  ;;  %862 = vmatprep.subr.bf16.mxu1 %v905_v2  ;;  %v534_v52 = vsel %vm517_vm3, %v531_v49, %v533_v50  ;;  %vm544_vm5 = vcmask 523264   ;;  %vm698_vm6 = vcmask 0  }
   0xf   : > { %s278_s30 = scalar_lea.vmem %s1057_s0, %s967_s27  ;;  %v309_v7 = vld [vmem:[%s289_s9] sm:$0x1]  ;;  %s286_s12 = scalar_lea.vmem %s1059_s2, %s967_s27  ;;  %v869_v53 = vpack.c.bf16 %v534_v52, %v532_v51 }
  0x10   : > { %v310_v6 = vld [vmem:[%s278_s30] sm:$0xff]  ;;  %491 = vperm.xlu0 %891, %v309_v7   ;;  %482 = vperm.xlu1 %892, %v309_v7   ;;  %s282_s18 = scalar_lea.vmem %s1058_s1, %s967_s27  ;;  %s292_s27 = scalar_lea.vmem %s1063_s6, %s1065_s22 }
  0x11   : > { %819 = vmatmul.mubr.msk.f32.vlgmr.msra.gmra.mrb[0].mxu0 %vm315_vm1, %v310_v6  ;;  %v465_v8 = vld [vmem:[%s286_s12] sm:$0xff]  ;;  %864 = vmatpush3.bf16.msra.mxu1 %v863_v43 }
  0x12   : > { %823 = vmatprep.mubr.msk.f32.mxu0 %vm906_vm0, %v907_v4  ;;  %v389_v24 = vld [vmem:[%s282_s18] sm:$0xff]  ;;  %865 = vmatprep.subr.bf16.mxu1 %v905_v2 }
  0x14   : > { %468 = vperm.xlu0 %891, %v465_v8  }
  0x15   : > { %867 = vmatpush3.bf16.msra.mxu1 %v866_v46 }
  0x16   : > { %868 = vmatprep.subr.bf16.mxu1 %v905_v2 }
  0x19   : > { %870 = vmatpush3.bf16.msra.mxu1 %v869_v53 }
  0x8f   : > { %v492_v14 = vpop.permute.xlu0 %491  ;;  %v483_v3 = vpop.permute.xlu1 %482 }
  0x90   : > { %v497_v15 = vrot.slane %v492_v14, %v982_v12  ;;  %v488_v6 = vrot.slane %v483_v3, %v982_v12 }
  0x92   : > { %v498_v17 = vmul.f32 %v497_v15, %v295_v13  ;;  %v875_v13 = vpack.c.bf16 %v307_v11, %v306_v10 }
  0x93   : > { %v469_v60 = vpop.permute.xlu0 %468 }
  0x94   : > { %v502_v18 = vadd.f32 %v500_v16, %v498_v17  ;;  %v308_v17 = vld [vmem:[%s1062_s5 + $0x20] sm:$0x1] }
  0x96   : > { %v504_v19 = vrot.slane %v502_v18, 1 }
  0x98   : > { %505 = vrot.lane.b32.xlu1 %v504_v19, %s910_s15 }
  0xe4   : > { %v385_v21 = vpop.f32.mrb[0].mxu0 }
  0xe5   : > { %v386_v22 = vadd.f32 %v385_v21, %v314_v20  ;;  %v820_v23 = vpop.f32.mrb[1].mxu0 }
  0xe7   : > { %822 = vmatpush3.msra.mxu0 %v386_v22 }
  0xe8   : > { %824 = vmatmul.mubr.msk.f32.vlgmr.msra.gmra.mrb[2].mxu0 %vm390_vm2, %v389_v24  ;;  %871 = vmatprep.subr.bf16.mxu0 %v905_v2 }
  0xe9   : > { %853 = vmatprep.mubr.msk.f32.mxu0 %vm906_vm0, %v907_v4  ;;  %873 = vmatpush3.bf16.msra.mxu0 %v872_v56 }
  0xea   : > { %874 = vmatprep.subr.bf16.mxu0 %v905_v2 }
  0xed   : > { %876 = vmatpush3.bf16.msra.mxu0 %v875_v13 }
 0x10a   : > { %v506_v8 = vpop.permute.xlu1 %505 }
 0x1bb   : > { %v460_v57 = vpop.f32.mrb[2].mxu0 }
 0x1bc   : > { %v464_v58 = vmax.f32 %v460_v57, 0.0  ;;  %v825_v59 = vpop.f32.mrb[3].mxu0 }
 0x1be   : > { %v471_v61 = vmul.f32 %v469_v60, %v464_v58 }
 0x1c0   : > { %v473_v62 = vsel %vm472_vm4, %v471_v61, 0.0 }
 0x1c1   : > { %v474_v63 = vrot.slane %v473_v62, 4 }
 0x1c3   : > { %v475_v0 = vadd.f32 %v474_v63, %v473_v62 }
 0x1c5   : > { %v476_v1 = vrot.slane %v475_v0, 2 }
 0x1c7   : > { %v477_v4 = vadd.f32 %v476_v1, %v475_v0 }
 0x1c9   : > { %v478_v5 = vrot.slane %v477_v4, 1 }
 0x1cb   : > { %v479_v7 = vadd.f32 %v478_v5, %v477_v4 }
 0x1cd   : > { %v489_v9 = vmul.f32 %v488_v6, %v479_v7 }
 0x1cf   : > { %v508_v2 = vsel %vm472_vm4, %v489_v9, %v506_v8 }
 0x1d0   : > { %843 = vmatmul.mubr.msk.f32.vlgmr.msra.gmra.mrb[0].mxu1 %vm544_vm5, %v508_v2 }
 0x2a3   : > { %v614_v14 = vpop.f32.mrb[0].mxu1 }
 0x2a4   : > { %v615_v12 = vadd.f32 %v614_v14, %v533_v50  ;;  %v844_v15 = vpop.f32.mrb[1].mxu1 }
 0x2a6   : > { %v618_v16 = vmax.f32 %v615_v12, 0.0 }
 0x2a8   : > { %854 = vmatmul.mubr.msk.f32.vlgmr.msra.gmra.mrb[4].mxu0 %vm472_vm4, %v618_v16 }
 0x37b   : > { %v688_v18 = vpop.f32.mrb[4].mxu0 }
 0x37c   : > { %v689_v19 = vadd.f32 %v688_v18, %v308_v17  ;;  %v855_v20 = vpop.f32.mrb[5].mxu0 }
 0x37e   : > { %v792_v21 = vmul.f32 -1.442695, %v689_v19 }
 0x380   : > { %893 = vpow2.f32 %v792_v21 }
 0x38a   : > { %v894_v22 = vpop.eup %893 }
 0x38b   : > { %v695_v23 = vadd.f32 1.0, %v894_v22 }
 0x38d   : > { %895 = vrcp.f32 %v695_v23 }
 0x397   : > { %v896_v24 = vpop.eup %895 }
 0x398   : > { %699 = vst.msk [vmem:[%s292_s27] sm:$0x1] %vm698_vm6, %v896_v24 }
 0x399 PF: > { %s16_s21 = sadd.s32 1, %s903_s21  }
 0x39a   : > { %p13_p4 = scmp.ge.s32.totalorder %s16_s21, 4  }
 0x39c   :  { %15 = sbr.rel (!%p13_p4) target bundleno = 1 (0x1), region = 83 }

</bundles_post_ra>
